<compile_context>
chip_gen: v7x
topology: tpu7x:2x2x1
jax: 0.10.0
libtpu: 0.0.40
codegen_flags: <defaults>
</compile_context>

<pallas_src>
import functools
import math

import jax
import jax.numpy as jnp
import numpy as np
from jax.experimental import pallas as pl
from jax.experimental.pallas import tpu as pltpu


def _round_up(x, m):
    return ((x + m - 1) // m) * m


# ----------------------------------------------------------------------------
# Tiled, pipelined matmul kernel (fused QKV projection and W_o)
# ----------------------------------------------------------------------------
def _matmul_kernel(x_ref, w_ref, o_ref, acc_ref):
    @pl.when(pl.program_id(2) == 0)
    def _():
        acc_ref[...] = jnp.zeros_like(acc_ref)

    acc_ref[...] += jnp.dot(
        x_ref[...], w_ref[...], preferred_element_type=jnp.float32
    )

    @pl.when(pl.program_id(2) == pl.num_programs(2) - 1)
    def _():
        o_ref[...] = acc_ref[...].astype(o_ref.dtype)


def matmul_pallas(x, wt, *, compute_dtype=jnp.bfloat16, tm=512, tn=512, tk=256):
    """x: (M, K), wt: (K, N) pre-transposed weight. Returns f32 x @ wt.

    MXU operands are cast to `compute_dtype`; accumulation stays f32. Axes that do
    not divide the tile are zero-padded (zeros contribute nothing on K) and the
    result is sliced back, so blocks are always (8,128)-aligned or full-axis.
    """
    M, K = x.shape
    Kw, N = wt.shape
    assert K == Kw, (K, Kw)
    x = x.astype(compute_dtype)
    wt = wt.astype(compute_dtype)

    tm = min(tm, _round_up(M, 8))
    tn = min(tn, _round_up(N, 128))
    tk = min(tk, _round_up(K, 128))
    Mp, Np, Kp = _round_up(M, tm), _round_up(N, tn), _round_up(K, tk)
    if (Mp, Kp) != (M, K):
        x = jnp.pad(x, ((0, Mp - M), (0, Kp - K)))
    if (Kp, Np) != (K, N):
        wt = jnp.pad(wt, ((0, Kp - K), (0, Np - N)))

    out = pl.pallas_call(
        _matmul_kernel,
        out_shape=jax.ShapeDtypeStruct((Mp, Np), jnp.float32),
        grid=(Mp // tm, Np // tn, Kp // tk),
        in_specs=[
            pl.BlockSpec((tm, tk), lambda i, j, k: (i, k)),
            pl.BlockSpec((tk, tn), lambda i, j, k: (k, j)),
        ],
        out_specs=pl.BlockSpec((tm, tn), lambda i, j, k: (i, j)),
        scratch_shapes=[pltpu.VMEM((tm, tn), jnp.float32)],
        compiler_params=pltpu.CompilerParams(
            dimension_semantics=("parallel", "parallel", "arbitrary")
        ),
    )(x, wt)
    if (Mp, Np) != (M, N):
        out = out[:M, :N]
    return out


# ----------------------------------------------------------------------------
# Attention kernel: one (batch, head, q-tile) per grid step.
# qp = [mq*cos(a_q) | mq*sin(a_q)], kp = [mk*cos(b_k) | mk*sin(b_k)]  ->  scores = qp @ kp.T
# ----------------------------------------------------------------------------
def _cmha_attention_kernel(qp_ref, kp_ref, v_ref, *out_refs, approx_recip, with_attn):
    if with_attn:
        attn_ref, out_ref = out_refs
    else:
        (out_ref,) = out_refs

    qp = qp_ref[0, 0]          # (tq, 2*dh)  compute dtype
    kp = kp_ref[0, 0]          # (KL, 2*dh)
    v = v_ref[0, 0]            # (KL, dv)

    dn = (((1,), (1,)), ((), ()))  # contract feature dim, no batching
    scores = jax.lax.dot_general(
        qp, kp, dn, preferred_element_type=jnp.float32
    )  # (tq, KL) f32

    # softmax over keys (f32 for stability on every TPU generation)
    m = jnp.max(scores, axis=-1, keepdims=True)
    e = jnp.exp(scores - m)
    s = jnp.sum(e, axis=-1, keepdims=True)
    attn = e * pl.reciprocal(s, approx=approx_recip)

    if with_attn:
        attn_ref[0, 0] = attn.astype(attn_ref.dtype)
    out_ref[0, 0] = jnp.dot(
        attn.astype(v.dtype), v, preferred_element_type=jnp.float32
    ).astype(out_ref.dtype)


def cmha_attention_pallas(qp, kp, v, *, tq=256, with_attn=True):
    """qp: (B,H,QL,2dh), kp: (B,H,KL,2dh), v: (B,H,KL,dv) — all in the compute dtype.
    Returns (attention_weights (B,H,QL,KL) or None, out_heads (B,H,QL,dv) f32)."""
    B, H, QL, dh2 = qp.shape
    KL = kp.shape[2]
    dv = v.shape[3]
    compute_dtype = qp.dtype
    approx_recip = compute_dtype == jnp.bfloat16

    tq = min(tq, _round_up(QL, 8))
    QLp = _round_up(QL, tq)
    if QLp != QL:
        qp = jnp.pad(qp, ((0, 0), (0, 0), (0, QLp - QL), (0, 0)))
    nq = QLp // tq

    out_shapes, out_specs = [], []
    if with_attn:
        out_shapes.append(jax.ShapeDtypeStruct((B, H, QLp, KL), compute_dtype))
        out_specs.append(pl.BlockSpec((1, 1, tq, KL), lambda b, h, q: (b, h, q, 0)))
    out_shapes.append(jax.ShapeDtypeStruct((B, H, QLp, dv), jnp.float32))
    out_specs.append(pl.BlockSpec((1, 1, tq, dv), lambda b, h, q: (b, h, q, 0)))

    kernel = functools.partial(
        _cmha_attention_kernel, approx_recip=approx_recip, with_attn=with_attn
    )
    results = pl.pallas_call(
        kernel,
        out_shape=tuple(out_shapes),
        grid=(B, H, nq),
        in_specs=[
            pl.BlockSpec((1, 1, tq, dh2), lambda b, h, q: (b, h, q, 0)),
            pl.BlockSpec((1, 1, KL, dh2), lambda b, h, q: (b, h, 0, 0)),
            pl.BlockSpec((1, 1, KL, dv), lambda b, h, q: (b, h, 0, 0)),
        ],
        out_specs=tuple(out_specs),
        compiler_params=pltpu.CompilerParams(
            dimension_semantics=("parallel", "parallel", "arbitrary")
        ),
    )(qp, kp, v)

    if with_attn:
        attn, out_heads = results
    else:
        attn = None
        (out_heads,) = results
    if QLp != QL:
        out_heads = out_heads[:, :, :QL, :]
        if with_attn:
            attn = attn[:, :, :QL, :]
    return attn, out_heads


# ----------------------------------------------------------------------------
# Parameter prep (done ONCE) + module forward glue
# ----------------------------------------------------------------------------
def prepare_params(params, compute_dtype=jnp.bfloat16):
    """Fuse + pre-transpose projection weights and pre-cast them to the MXU dtype."""
    w_qkv = jnp.concatenate([params["W_q"], params["W_k"], params["W_v"]], axis=0)
    return {
        "W_qkv_t": jnp.asarray(w_qkv.T, dtype=compute_dtype),        # (D, 3D)
        "W_o_t": jnp.asarray(params["W_o"].T, dtype=compute_dtype),  # (D, D)
        "delta": params["delta"],
        "bias": params["bias"],
        "freqs": params["freqs"],
    }


def _euler_transform(x, dh):
    real, imag = x[..., :dh], x[..., dh:]
    magnitude = jnp.sqrt(real * real + imag * imag + 1e-9)
    phase = jnp.arctan2(imag, real)
    return magnitude, phase


@functools.partial(jax.jit, static_argnums=(2, 3, 4))
def cmha_forward(hidden_states, prepared, num_heads,
                 compute_dtype=jnp.bfloat16, with_attn=True):
    """ComplexMultiHeadAttentionV2.forward with attention_mask=None,
    past_key_value=None, use_cache=False.
    Returns (output (B,QL,D) f32, attention_weights (B,H,QL,KL) or None)."""
    B, QL, D = hidden_states.shape
    H = num_heads
    dk = D // H
    dh = dk // 2

    # Fused Q/K/V projection: x read once, single tiled bf16-MXU matmul pass.
    x2d = hidden_states.reshape(B * QL, D)
    qkv = matmul_pallas(x2d, prepared["W_qkv_t"], compute_dtype=compute_dtype)
    Q = qkv[:, :D].reshape(B, QL, H, dk).transpose(0, 2, 1, 3)
    K = qkv[:, D:2 * D].reshape(B, QL, H, dk).transpose(0, 2, 1, 3)
    V = qkv[:, 2 * D:].reshape(B, QL, H, dk).transpose(0, 2, 1, 3)

    mq, pq = _euler_transform(Q, dh)
    mk, pk = _euler_transform(K, dh)

    # Phase split + cos/sin prep, done once in glue (past_key_len = 0, no KV cache);
    # XLA fuses it with the head transpose into a single producer of qp/kp.
    delta = prepared["delta"].reshape(1, H, 1, dh)
    bias = prepared["bias"].reshape(1, H, 1, dh)
    freqs = prepared["freqs"].reshape(1, 1, 1, dh)
    pos = jnp.arange(QL, dtype=jnp.float32).reshape(1, 1, QL, 1) * freqs
    a_q = delta * pq + bias + pos            # (B,H,QL,dh)
    b_k = delta * pk + pos                   # (B,H,KL,dh)  (KL == QL, past_key_len=0)

    # Pack [cos|sin] along the feature axis -> one MXU matmul with lane dim 2*dh,
    # already in the compute dtype so the kernel DMAs half the bytes.
    qp = jnp.concatenate([mq * jnp.cos(a_q), mq * jnp.sin(a_q)],
                         axis=-1).astype(compute_dtype)
    kp = jnp.concatenate([mk * jnp.cos(b_k), mk * jnp.sin(b_k)],
                         axis=-1).astype(compute_dtype)
    vc = V.astype(compute_dtype)

    attn, out_heads = cmha_attention_pallas(qp, kp, vc, with_attn=with_attn)

    out = out_heads.transpose(0, 2, 1, 3).reshape(B * QL, D)
    out = matmul_pallas(out, prepared["W_o_t"],
                        compute_dtype=compute_dtype).reshape(B, QL, D)
    return out, attn


# ----------------------------------------------------------------------------
# Pure-JAX reference (mirrors the PyTorch math literally, for validation)
# ----------------------------------------------------------------------------
def reference_forward(hidden_states, params, num_heads):
    B, QL, D = hidden_states.shape
    H = num_heads
    dk = D // H
    dh = dk // 2

    Q = (hidden_states @ params["W_q"].T).reshape(B, QL, H, dk).transpose(0, 2, 1, 3)
    K = (hidden_states @ params["W_k"].T).reshape(B, QL, H, dk).transpose(0, 2, 1, 3)
    V = (hidden_states @ params["W_v"].T).reshape(B, QL, H, dk).transpose(0, 2, 1, 3)

    mq, pq = _euler_transform(Q, dh)
    mk, pk = _euler_transform(K, dh)

    delta = params["delta"].reshape(1, H, 1, 1, dh)
    bias = params["bias"].reshape(1, H, 1, 1, dh)

    q_pos = jnp.arange(QL, dtype=jnp.float32)[:, None]
    k_pos = jnp.arange(QL, dtype=jnp.float32)[None, :]
    delta_p = (q_pos - k_pos)[..., None] * params["freqs"][None, None, :]  # (QL,KL,dh)

    as_ = pq[:, :, :, None, :] - pk[:, :, None, :, :]
    combined = delta * as_ + bias + delta_p[None, None]
    scores = jnp.einsum("bhqd,bhkd,bhqkd->bhqk", mq, mk, jnp.cos(combined))
    attn = jax.nn.softmax(scores, axis=-1)
    out = jnp.einsum("bhqk,bhkd->bhqd", attn, V)
    out = out.transpose(0, 2, 1, 3).reshape(B, QL, D)
    out = out @ params["W_o"].T
    return out, attn


# ----------------------------------------------------------------------------
# Main
# ----------------------------------------------------------------------------
if __name__ == "__main__":
    B, QL, D, H = 2, 8, 32, 4          # d_k = 8, d_k_half = 4
    dk = D // H
    dh = dk // 2

    key = jax.random.PRNGKey(0)
    kq, kk, kv, ko, kd, kx = jax.random.split(key, 6)

    bound = math.sqrt(6.0 / (D + D))   # xavier_uniform for square Linear
    params = {
        "W_q": jax.random.uniform(kq, (D, D), jnp.float32, -bound, bound),
        "W_k": jax.random.uniform(kk, (D, D), jnp.float32, -bound, bound),
        "W_v": jax.random.uniform(kv, (D, D), jnp.float32, -bound, bound),
        "W_o": jax.random.uniform(ko, (D, D), jnp.float32, -bound, bound),
        "delta": jax.random.normal(kd, (H, dh), jnp.float32) / math.sqrt(dh),
        "bias": jnp.zeros((H, dh), jnp.float32),
        "freqs": 10000.0 ** (-jnp.arange(0, dk // 2, dtype=jnp.float32) * 2.0 / dk),
    }
    x = jax.random.normal(kx, (B, QL, D), jnp.float32)

    ref_out, ref_attn = reference_forward(x, params, H)

    # --- f32 mode: exact-precision validation of the kernel math (1e-4) ---
    prepared_f32 = prepare_params(params, jnp.float32)
    out_f32, attn_f32 = cmha_forward(x, prepared_f32, H, jnp.float32, True)
    jax.block_until_ready((out_f32, attn_f32))
    np.testing.assert_allclose(np.asarray(attn_f32), np.asarray(ref_attn),
                               rtol=1e-4, atol=1e-4)
    np.testing.assert_allclose(np.asarray(out_f32), np.asarray(ref_out),
                               rtol=1e-4, atol=1e-4)

    # --- bf16 production mode (matches the original module's autocast(bf16) block);
    #     relaxed tolerance per bf16 MXU operands + bf16 attn-weights store. ---
    prepared_bf16 = prepare_params(params, jnp.bfloat16)
    out_bf16, attn_bf16 = cmha_forward(x, prepared_bf16, H, jnp.bfloat16, True)
    jax.block_until_ready((out_bf16, attn_bf16))
    np.testing.assert_allclose(np.asarray(attn_bf16.astype(jnp.float32)),
                               np.asarray(ref_attn), rtol=1e-1, atol=1e-1)
    np.testing.assert_allclose(np.asarray(out_bf16.astype(jnp.float32)),
                               np.asarray(ref_out), rtol=1e-1, atol=1e-1)

    # --- no-attention-weights path (skips the O(L^2) HBM writeback entirely) ---
    out_noattn, _ = cmha_forward(x, prepared_bf16, H, jnp.bfloat16, False)
    jax.block_until_ready(out_noattn)

    print("KERNEL_OK")
</pallas_src>

<mosaic_0001>
module attributes {stable_mosaic.version = 11 : i64} {
  func.func @_matmul_kernel(%arg0: i32, %arg1: i32, %arg2: i32, %arg3: memref<16x128xf32, #tpu.memory_space<vmem>>, %arg4: memref<128x128xf32, #tpu.memory_space<vmem>>, %arg5: memref<16x128xf32, #tpu.memory_space<vmem>>, %arg6: memref<16x128xf32, #tpu.memory_space<vmem>>) attributes {dimension_semantics = [#tpu.dimension_semantics<parallel>, #tpu.dimension_semantics<parallel>, #tpu.dimension_semantics<arbitrary>], iteration_bounds = array<i64: 1, 1, 1>, scalar_prefetch = 0 : i64, scratch_operands = 1 : i64, tpu.core_type = #tpu.core_type<tc>, window_params = [{transform_indices = @transform_0, window_bounds = array<i64: 16, 128>}, {transform_indices = @transform_1, window_bounds = array<i64: 128, 128>}, {transform_indices = @transform_2, window_bounds = array<i64: 16, 128>}]} {
    %c0_i32 = arith.constant 0 : i32
    %0 = arith.cmpi eq, %arg2, %c0_i32 : i32
    %1 = arith.extui %0 : i1 to i32
    %c0_i32_0 = arith.constant 0 : i32
    %2 = arith.cmpi ne, %1, %c0_i32_0 : i32
    scf.if %2 {
      %cst_10 = arith.constant 0.000000e+00 : f32
      %12 = vector.broadcast %cst_10 : f32 to vector<16x128xf32>
      %c0_11 = arith.constant 0 : index
      %c0_12 = arith.constant 0 : index
      %13 = vector.load %arg6[%c0_11, %c0_12] : memref<16x128xf32, #tpu.memory_space<vmem>>, vector<16x128xf32>
      tpu.vector_store %arg6[%c0_11, %c0_12], %12 {strides = array<i32>} : memref<16x128xf32, #tpu.memory_space<vmem>>, vector<16x128xf32>,
    } else {
    }
    %c0 = arith.constant 0 : index
    %c0_1 = arith.constant 0 : index
    %3 = vector.load %arg6[%c0, %c0_1] : memref<16x128xf32, #tpu.memory_space<vmem>>, vector<16x128xf32>
    %c0_2 = arith.constant 0 : index
    %c0_3 = arith.constant 0 : index
    %4 = vector.load %arg3[%c0_2, %c0_3] : memref<16x128xf32, #tpu.memory_space<vmem>>, vector<16x128xf32>
    %c0_4 = arith.constant 0 : index
    %c0_5 = arith.constant 0 : index
    %5 = vector.load %arg4[%c0_4, %c0_5] : memref<128x128xf32, #tpu.memory_space<vmem>>, vector<128x128xf32>
    %cst = arith.constant dense<0.000000e+00> : vector<16x128xf32>
    %6 = tpu.matmul %4, %5, %cst {dimension_numbers = #tpu.dot_dimension_numbers<[1], [0], [0], [1], [0, 0, 1, 1], [], []>} : vector<16x128xf32>, vector<128x128xf32>, vector<16x128xf32> -> vector<16x128xf32>
    %7 = arith.addf %3, %6 : vector<16x128xf32>
    %c0_6 = arith.constant 0 : index
    %c0_7 = arith.constant 0 : index
    %8 = vector.load %arg6[%c0_6, %c0_7] : memref<16x128xf32, #tpu.memory_space<vmem>>, vector<16x128xf32>
    tpu.vector_store %arg6[%c0_6, %c0_7], %7 {strides = array<i32>} : memref<16x128xf32, #tpu.memory_space<vmem>>, vector<16x128xf32>,
    %c0_i32_8 = arith.constant 0 : i32
    %9 = arith.cmpi eq, %arg2, %c0_i32_8 : i32
    %10 = arith.extui %9 : i1 to i32
    %c0_i32_9 = arith.constant 0 : i32
    %11 = arith.cmpi ne, %10, %c0_i32_9 : i32
    scf.if %11 {
      %c0_10 = arith.constant 0 : index
      %c0_11 = arith.constant 0 : index
      %12 = vector.load %arg6[%c0_10, %c0_11] : memref<16x128xf32, #tpu.memory_space<vmem>>, vector<16x128xf32>
      %c0_12 = arith.constant 0 : index
      %c0_13 = arith.constant 0 : index
      %13 = vector.load %arg5[%c0_12, %c0_13] : memref<16x128xf32, #tpu.memory_space<vmem>>, vector<16x128xf32>
      tpu.vector_store %arg5[%c0_12, %c0_13], %12 {strides = array<i32>} : memref<16x128xf32, #tpu.memory_space<vmem>>, vector<16x128xf32>,
    } else {
    }
    return
  }
  func.func @transform_0(%arg0: i32, %arg1: i32, %arg2: i32) -> (i32, i32) {
    %c0_i32 = arith.constant 0 : i32
    return %arg0, %arg2 : i32, i32
  }
  func.func @transform_1(%arg0: i32, %arg1: i32, %arg2: i32) -> (i32, i32) {
    %c0_i32 = arith.constant 0 : i32
    return %arg2, %arg1 : i32, i32
  }
  func.func @transform_2(%arg0: i32, %arg1: i32, %arg2: i32) -> (i32, i32) {
    %c0_i32 = arith.constant 0 : i32
    return %arg0, %arg1 : i32, i32
  }
}

module attributes {stable_mosaic.version = 11 : i64} {
  func.func @_cmha_attention_kernel(%arg0: i32, %arg1: i32, %arg2: i32, %arg3: memref<1x1x8x8xf32, #tpu.memory_space<vmem>>, %arg4: memref<1x1x8x8xf32, #tpu.memory_space<vmem>>, %arg5: memref<1x1x8x8xf32, #tpu.memory_space<vmem>>, %arg6: memref<1x1x8x8xf32, #tpu.memory_space<vmem>>, %arg7: memref<1x1x8x8xf32, #tpu.memory_space<vmem>>) attributes {dimension_semantics = [#tpu.dimension_semantics<parallel>, #tpu.dimension_semantics<parallel>, #tpu.dimension_semantics<arbitrary>], iteration_bounds = array<i64: 2, 4, 1>, scalar_prefetch = 0 : i64, scratch_operands = 0 : i64, tpu.core_type = #tpu.core_type<tc>, window_params = [{transform_indices = @transform_0, window_bounds = array<i64: 1, 1, 8, 8>}, {transform_indices = @transform_1, window_bounds = array<i64: 1, 1, 8, 8>}, {transform_indices = @transform_2, window_bounds = array<i64: 1, 1, 8, 8>}, {transform_indices = @transform_3, window_bounds = array<i64: 1, 1, 8, 8>}, {transform_indices = @transform_4, window_bounds = array<i64: 1, 1, 8, 8>}]} {
    %c0 = arith.constant 0 : index
    %c0_0 = arith.constant 0 : index
    %c0_1 = arith.constant 0 : index
    %c0_2 = arith.constant 0 : index
    %0 = vector.load %arg3[%c0, %c0_0, %c0_1, %c0_2] : memref<1x1x8x8xf32, #tpu.memory_space<vmem>>, vector<1x1x8x8xf32>
    %1 = vector.shape_cast %0 : vector<1x1x8x8xf32> to vector<8x8xf32>
    %c0_3 = arith.constant 0 : index
    %c0_4 = arith.constant 0 : index
    %c0_5 = arith.constant 0 : index
    %c0_6 = arith.constant 0 : index
    %2 = vector.load %arg4[%c0_3, %c0_4, %c0_5, %c0_6] : memref<1x1x8x8xf32, #tpu.memory_space<vmem>>, vector<1x1x8x8xf32>
    %3 = vector.shape_cast %2 : vector<1x1x8x8xf32> to vector<8x8xf32>
    %c0_7 = arith.constant 0 : index
    %c0_8 = arith.constant 0 : index
    %c0_9 = arith.constant 0 : index
    %c0_10 = arith.constant 0 : index
    %4 = vector.load %arg5[%c0_7, %c0_8, %c0_9, %c0_10] : memref<1x1x8x8xf32, #tpu.memory_space<vmem>>, vector<1x1x8x8xf32>
    %5 = vector.shape_cast %4 : vector<1x1x8x8xf32> to vector<8x8xf32>
    %cst = arith.constant dense<0.000000e+00> : vector<8x8xf32>
    %6 = tpu.matmul %1, %3, %cst {dimension_numbers = #tpu.dot_dimension_numbers<[1], [1], [0], [0], [0, 0, 1, 0], [], []>} : vector<8x8xf32>, vector<8x8xf32>, vector<8x8xf32> -> vector<8x8xf32>
    %cst_11 = arith.constant dense<0xFF800000> : vector<8xf32>
    %7 = vector.multi_reduction <maximumf>, %6, %cst_11 [1] : vector<8x8xf32> to vector<8xf32>
    %8 = vector.shape_cast %7 : vector<8xf32> to vector<8x1xf32>
    %9 = vector.broadcast %8 : vector<8x1xf32> to vector<8x8xf32>
    %10 = arith.subf %6, %9 : vector<8x8xf32>
    %11 = math.exp %10 : vector<8x8xf32>
    %cst_12 = arith.constant dense<0.000000e+00> : vector<8xf32>
    %12 = vector.multi_reduction <add>, %11, %cst_12 [1] : vector<8x8xf32> to vector<8xf32>
    %13 = vector.shape_cast %12 : vector<8xf32> to vector<8x1xf32>
    %14 = tpu.reciprocal %13 : vector<8x1xf32> -> vector<8x1xf32>
    %15 = vector.broadcast %14 : vector<8x1xf32> to vector<8x8xf32>
    %16 = arith.mulf %11, %15 : vector<8x8xf32>
    %c0_13 = arith.constant 0 : index
    %c0_14 = arith.constant 0 : index
    %c0_15 = arith.constant 0 : index
    %c0_16 = arith.constant 0 : index
    %17 = vector.load %arg6[%c0_13, %c0_14, %c0_15, %c0_16] : memref<1x1x8x8xf32, #tpu.memory_space<vmem>>, vector<1x1x8x8xf32>
    %18 = vector.shape_cast %17 : vector<1x1x8x8xf32> to vector<8x8xf32>
    %19 = vector.shape_cast %16 : vector<8x8xf32> to vector<1x1x8x8xf32>
    tpu.vector_store %arg6[%c0_13, %c0_14, %c0_15, %c0_16], %19 {strides = array<i32>} : memref<1x1x8x8xf32, #tpu.memory_space<vmem>>, vector<1x1x8x8xf32>,
    %cst_17 = arith.constant dense<0.000000e+00> : vector<8x8xf32>
    %20 = tpu.matmul %16, %5, %cst_17 {dimension_numbers = #tpu.dot_dimension_numbers<[1], [0], [0], [1], [0, 0, 1, 1], [], []>} : vector<8x8xf32>, vector<8x8xf32>, vector<8x8xf32> -> vector<8x8xf32>
    %c0_18 = arith.constant 0 : index
    %c0_19 = arith.constant 0 : index
    %c0_20 = arith.constant 0 : index
    %c0_21 = arith.constant 0 : index
    %21 = vector.load %arg7[%c0_18, %c0_19, %c0_20, %c0_21] : memref<1x1x8x8xf32, #tpu.memory_space<vmem>>, vector<1x1x8x8xf32>
    %22 = vector.shape_cast %21 : vector<1x1x8x8xf32> to vector<8x8xf32>
    %23 = vector.shape_cast %20 : vector<8x8xf32> to vector<1x1x8x8xf32>
    tpu.vector_store %arg7[%c0_18, %c0_19, %c0_20, %c0_21], %23 {strides = array<i32>} : memref<1x1x8x8xf32, #tpu.memory_space<vmem>>, vector<1x1x8x8xf32>,
    return
  }
  func.func @transform_0(%arg0: i32, %arg1: i32, %arg2: i32) -> (i32, i32, i32, i32) {
    %c0_i32 = arith.constant 0 : i32
    %c0_i32_0 = arith.constant 0 : i32
    return %arg0, %arg1, %arg2, %c0_i32 : i32, i32, i32, i32
  }
  func.func @transform_1(%arg0: i32, %arg1: i32, %arg2: i32) -> (i32, i32, i32, i32) {
    %c0_i32 = arith.constant 0 : i32
    %c0_i32_0 = arith.constant 0 : i32
    %c0_i32_1 = arith.constant 0 : i32
    return %arg0, %arg1, %c0_i32, %c0_i32_0 : i32, i32, i32, i32
  }
  func.func @transform_2(%arg0: i32, %arg1: i32, %arg2: i32) -> (i32, i32, i32, i32) {
    %c0_i32 = arith.constant 0 : i32
    %c0_i32_0 = arith.constant 0 : i32
    %c0_i32_1 = arith.constant 0 : i32
    return %arg0, %arg1, %c0_i32, %c0_i32_0 : i32, i32, i32, i32
  }
  func.func @transform_3(%arg0: i32, %arg1: i32, %arg2: i32) -> (i32, i32, i32, i32) {
    %c0_i32 = arith.constant 0 : i32
    %c0_i32_0 = arith.constant 0 : i32
    return %arg0, %arg1, %arg2, %c0_i32 : i32, i32, i32, i32
  }
  func.func @transform_4(%arg0: i32, %arg1: i32, %arg2: i32) -> (i32, i32, i32, i32) {
    %c0_i32 = arith.constant 0 : i32
    %c0_i32_0 = arith.constant 0 : i32
    return %arg0, %arg1, %arg2, %c0_i32 : i32, i32, i32, i32
  }
}

</mosaic_0001>

<bundles_post_ra>
// kernel: cmha_forward.3
= control target key start
LH: loop header
LB: loop body
LE: loop exit
PB: predicated region body
PF: predicated region fallthrough
CT: control target
= control target key end

     0   :  { %s287_s1 = inlined_call_operand.vmem [shape: f32[128,128], index: 1, kind: input, shape index: {}]   ;;  %s288_s0 = inlined_call_operand.vmem [shape: f32[16,128], index: 0, kind: input, shape index: {}]   ;;  %s289_s2 = inlined_call_operand.vmem [shape: f32[16,128], index: 2, kind: output, shape index: {}]  }
   0x1   :  { %v21_v0 = vld [vmem:[%s287_s1] sm:$0xff]  ;;  %v22_v1 = vld [vmem:[%s287_s1 + $0x8] sm:$0xff]  ;;  %v23_v2 = vld [vmem:[%s287_s1 + $0x10] sm:$0xff] }
   0x2   :  { %v180_v3 = vpack.c.bf16 %v22_v1, %v21_v0  ;;  %v24_v4 = vld [vmem:[%s287_s1 + $0x18] sm:$0xff]  ;;  %v25_v6 = vld [vmem:[%s287_s1 + $0x20] sm:$0xff]  ;;  %v26_v7 = vld [vmem:[%s287_s1 + $0x28] sm:$0xff] }
   0x3   :  { %v184_v5 = vpack.c.bf16 %v24_v4, %v23_v2  ;;  %v188_v8 = vpack.c.bf16 %v26_v7, %v25_v6  ;;  %v19_v9 = vld [vmem:[%s288_s0] sm:$0xff]  ;;  %v27_v10 = vld [vmem:[%s287_s1 + $0x30] sm:$0xff]  ;;  %v28_v11 = vld [vmem:[%s287_s1 + $0x38] sm:$0xff] }
   0x4   :  { %181 = vmatprep.subr.bf16.mxu0 %v180_v3  ;;  %177 = vmatprep.mubr.f32.mxu0 %v19_v9  ;;  %v192_v12 = vpack.c.bf16 %v28_v11, %v27_v10  ;;  %v29_v13 = vld [vmem:[%s287_s1 + $0x40] sm:$0xff]  ;;  %v30_v14 = vld [vmem:[%s287_s1 + $0x48] sm:$0xff]  ;;  %v31_v16 = vld [vmem:[%s287_s1 + $0x50] sm:$0xff] }
   0x5   :  { %183 = vmatpush3.bf16.msra.mxu0 %v180_v3  ;;  %v196_v15 = vpack.c.bf16 %v30_v14, %v29_v13  ;;  %v32_v17 = vld [vmem:[%s287_s1 + $0x58] sm:$0xff]  ;;  %v33_v19 = vld [vmem:[%s287_s1 + $0x60] sm:$0xff]  ;;  %v34_v20 = vld [vmem:[%s287_s1 + $0x68] sm:$0xff] }
   0x6   :  { %185 = vmatprep.subr.bf16.mxu0 %v184_v5  ;;  %v200_v18 = vpack.c.bf16 %v32_v17, %v31_v16  ;;  %v204_v21 = vpack.c.bf16 %v34_v20, %v33_v19  ;;  %v35_v22 = vld [vmem:[%s287_s1 + $0x70] sm:$0xff]  ;;  %v36_v23 = vld [vmem:[%s287_s1 + $0x78] sm:$0xff]  ;;  %v20_v25 = vld [vmem:[%s288_s0 + $0x8] sm:$0xff] }
   0x7   :  { %v208_v24 = vpack.c.bf16 %v36_v23, %v35_v22 }
   0x9   :  { %187 = vmatpush3.bf16.msra.mxu0 %v184_v5 }
   0xa   :  { %189 = vmatprep.subr.bf16.mxu0 %v188_v8 }
   0xd   :  { %191 = vmatpush3.bf16.msra.mxu0 %v188_v8 }
   0xe   :  { %193 = vmatprep.subr.bf16.mxu0 %v192_v12 }
  0x11   :  { %195 = vmatpush3.bf16.msra.mxu0 %v192_v12 }
  0x12   :  { %197 = vmatprep.subr.bf16.mxu0 %v196_v15 }
  0x15   :  { %199 = vmatpush3.bf16.msra.mxu0 %v196_v15 }
  0x16   :  { %201 = vmatprep.subr.bf16.mxu0 %v200_v18 }
  0x19   :  { %203 = vmatpush3.bf16.msra.mxu0 %v200_v18 }
  0x1a   :  { %205 = vmatprep.subr.bf16.mxu0 %v204_v21 }
  0x1d   :  { %207 = vmatpush3.bf16.msra.mxu0 %v204_v21 }
  0x1e   :  { %209 = vmatprep.subr.bf16.mxu0 %v208_v24 }
  0x21   :  { %211 = vmatpush3.bf16.msra.mxu0 %v208_v24 }
  0x24   :  { %178 = vmatmul.mubr.f32.vlgmr.msra.gmra.mrb[0].mxu0 %v20_v25 }
  0xf7   :  { %v179_v26 = vpop.f32.mrb[0].mxu0 }
  0xf8   :  { %122 = vst [vmem:[%s289_s2 + $0x8] sm:$0xff] %v179_v26  ;;  %v103_v27 = vpop.f32.mrb[1].mxu0 }
  0xf9   :  { %121 = vst [vmem:[%s289_s2] sm:$0xff] %v103_v27 }

// kernel: cmha_forward.4
= control target key start
LH: loop header
LB: loop body
LE: loop exit
PB: predicated region body
PF: predicated region fallthrough
CT: control target
= control target key end

     0   :  { %s1083_s0 = inlined_call_operand.vmem [shape: f32[2,4,8,8], index: 0, kind: input, shape index: {}]   ;;  %s1084_s1 = inlined_call_operand.vmem [shape: f32[2,4,8,8], index: 1, kind: input, shape index: {}]   ;;  %s1085_s2 = inlined_call_operand.vmem [shape: f32[2,4,8,8], index: 2, kind: input, shape index: {}]   ;;  %s1086_s3 = inlined_call_operand.hbm [shape: f32[2,4,8,8], index: 3, kind: output, shape index: {0}]   ;;  %s1087_s4 = inlined_call_operand.vmem [shape: f32[2,4,8,8], index: 4, kind: output, shape index: {1}]  }
   0x1   :  { %1088 = sst [smem:[#allocation5_spill]] %s1083_s0 }
   0x2   :  { %1089 = sst [smem:[#allocation6_spill]] %s1084_s1 }
   0x3   :  { %10 = vsyncpa [#allocation3], 0 }
   0x4   :  { %12 = vsyncpa [#allocation3 + $0x1], 0  ;;  %s930_s15 = smov 0   ;;  %s932_s16 = smov 0  }
   0x5   :  { %s934_s17 = smov 0   ;;  %s936_s18 = smov 0  }
   0x6   :  { %s938_s19 = smov 0   ;;  %s940_s20 = smov 0  }
   0x7   :  { %s942_s21 = smov 0   ;;  %s944_s22 = smov 0  }
   0x8 LB: > { %s693_s23 = sadd.s32 4294967295, %s900_s22   ;;  %s694_s24 = sadd.s32 4294967294, %s900_s22   ;;  %s900_s22 = sphi %s944_s22, %s18_s22   ;;  %s896_s21 = sphi %s942_s21, %s1100_s21   ;;  %s892_s20 = sphi %s940_s20, %s1099_s20   ;;  %s888_s19 = sphi %s938_s19, %s1098_s19   ;;  %s884_s18 = sphi %s936_s18, %s1097_s18   ;;  %s880_s17 = sphi %s934_s17, %s1096_s17   ;;  %s876_s16 = sphi %s932_s16, %s1095_s16   ;;  %s872_s15 = sphi %s930_s15, %s1094_s15  }
   0x9   : > { %s33_s25 = sadd.s32 1, %s892_s20  ;;  %s37_s26 = sadd.s32 1, %s896_s21 }
   0xa   : > { %p35_p0 = scmp.ge.s32.totalorder %s33_s25, 4  ;;  %p144_p1 = scmp.ne.s32.totalorder %s880_s17, %s876_s16 }
   0xb   : > { %p145_p2 = scmp.eq.s32.totalorder %s693_s23, 7  ;;  %p150_p5 = scmp.ne.s32.totalorder %s876_s16, %s872_s15 }
   0xc   : > { %s1102_s25 = smov (%p35_p0, %s33_s25), 0  ;;  %s1104_s26 = smov (!%p35_p0, %s37_s26), %s896_s21 }
   0xd   : > { %s128_s27 = ssub.s32 %s892_s20, %s1102_s25  ;;  %p981_p3 = por %p145_p2, %p144_p1 }
   0xe   : > { %p39_p4 = scmp.ge.s32.totalorder %s1104_s26, 2  ;;  %p151_p6 = scmp.eq.s32.totalorder %s694_s24, 7 }
   0xf   : > { %p697_p7 = scmp.ge.s32.totalorder %s900_s22, 1  ;;  %p235_p9 = scmp.lt.s32.totalorder %s900_s22, 9 }
  0x10   : > { %s1106_s26 = smov (%p39_p4, %s1104_s26), 0  ;;  %p990_p8 = por %p151_p6, %p150_p5 }
  0x11   : > { %s127_s30 = ssub.s32 %s896_s21, %s1106_s26  ;;  %s134_s5 = sadd.s32 1, %s880_s17 }
  0x12   : > { %s129_s6 = sor.u32 %s128_s27, %s127_s30  ;;  %p236_p10 = pnand %p697_p7, %p235_p9 }
  0x13   : > { %p132_p11 = scmp.eq.s32.totalorder %s129_s6, 0  ;;  %p294_p12 = scmp.lt.s32.totalorder (!%p236_p10), %s888_s19, 1  ;;  %v902_v0 = vmov (!%p236_p10), 0.0   ;;  %vm903_vm0 = vmmov (!%p236_p10), 0   ;;  %vm335_vm1 = vcmask (!%p236_p10), 64512  }
  0x14   : > { %239 = sbr.rel (%p236_p10) target bundleno = 776 (0x308), region = 32  ;;  %p296_p13 = scmp.lt.s32.totalorder (!%p236_p10), %s884_s18, 3  ;;  %719 = vmatprep.subr.mxu0 (!%p236_p10), %v902_v0  ;;  %721 = vmatprep.mubr.msk.f32.mxu0 (!%p236_p10), %vm903_vm0, %v902_v0 }
  0x15   : > { %s999_s7 = scalar_select %p132_p11, %s880_s17, %s134_s5  }
  0x16   : > { %724 = vmatprep.subr.mxu1 (!%p236_p10), %v902_v0  ;;  %726 = vmatprep.mubr.msk.f32.mxu1 (!%p236_p10), %vm903_vm0, %v902_v0  ;;  %s1092_s1 = sld [smem:[#allocation6_spill]] (!%p236_p10)  ;;  %s1093_s0 = sld [smem:[#allocation5_spill]] (!%p236_p10) }
  0x17   : > { %s711_s13 = sshll.u32 (!%p236_p10), %s888_s19, 2 }
  0x18   : > { %s522_s14 = sadd.s32 (!%p236_p10), %s884_s18, %s711_s13 }
  0x1b   : > { %s295_s8 = scalar_select %p294_p12, %s888_s19, 1 }
  0x1c   : > { %s297_s9 = scalar_select %p296_p13, %s884_s18, 3 }
  0x1d   : > { %s699_s10 = sshll.u32 %s295_s8, 2 }
  0x1e   : > { %s302_s11 = sadd.s32 %s699_s10, %s297_s9  ;;  %s278_s9 = sand.u32 1, %s876_s16  }
  0x1f   : > { %s1005_s12 = sshll.u32 %s302_s11, 3  ;;  %s698_s10 = sshll.u32 %s278_s9, 3 }
  0x20   : > { %s312_s23 = scalar_lea.vmem %s1092_s1, %s1005_s12  ;;  %s304_s30 = scalar_lea.vmem %s1093_s0, %s1005_s12 }
  0x21   : > { %v333_v1 = vld [vmem:[%s312_s23] sm:$0xff]  ;;  %s320_s8 = scalar_lea.vmem %s1085_s2, %s1005_s12  ;;  %s280_s11 = scalar_lea.vmem [#allocation2], %s698_s10 }
  0x22   : > { %720 = vmatpush3.xpose.msk.msra.mxu0 %vm335_vm1, %v333_v1  ;;  %v332_v2 = vld [vmem:[%s304_s30] sm:$0xff]  ;;  %s712_s23 = sshll.u32 %s522_s14, 7  ;;  %s526_s24 = sshll.u32 %s280_s11, 4  ;;  %s527_s24 = int_to_ptr.vmem [resolvable:$true] %s526_s24 }
  0x23   : > { %v334_v11 = vld [vmem:[%s320_s8] sm:$0xff]  ;;  %s1031_s5 = scalar_lea.hbm %s1086_s3, %s712_s23  ;;  %s499_s6 = scalar_lea.sflag [#allocation3], %s278_s9 }
  0x24   : > { %725 = vmatpush3.msra.mxu1 %v334_v11  ;;  %s806_s8 = scalar_lea.vmem %s527_s24, 128  ;;  %s904_s0 = smov [#allocation2]  }
  0x25   : > { %722 = vmatmul.mubr.msk.f32.vlgmr.msra.gmra.mrb[0].mxu0 %vm335_vm1, %v332_v2  ;;  %p807_p0 = scmp.ne.s32.totalorder %s527_s24, %s806_s8  ;;  %s810_s10 = sshll.u32 %s904_s0, 4  ;;  %s811_s10 = int_to_ptr.vmem [resolvable:$false] %s810_s10 }
  0x26   : > { %s812_s1 = scalar_lea.vmem %s811_s10, 256  ;;  %p813_p4 = scmp.lt.s32.totalorder %s527_s24, %s811_s10 }
  0x27   : > { %p808_p1 = pnand %p807_p0, %p981_p3  ;;  %p814_p5 = scmp.lt.s32.totalorder %s812_s1, %s806_s8 }
  0x29   : > { %p809_p2 = pneg %p808_p1  ;;  %p815_p6 = por %p814_p5, %p813_p4 }
  0x2b   : > { %p816_p7 = pnand %p815_p6, %p809_p2 }
  0xf8   : > { %v408_v3 = vpop.f32.mrb[0].mxu0 }
  0xf9   : > { %v723_v4 = vpop.f32.mrb[1].mxu0  ;;  %v412_v5 = vsel %vm335_vm1, %v408_v3, -inf }
  0xfa   : > { %413 = vmax.xlane.f32.xlu0 %v412_v5 }
 0x187   : > { %v414_v6 = vpop.xlane.xlu0 %413 }
 0x188   : > { %v415_v7 = vsub.f32 %v408_v3, %v414_v6 }
 0x18a   : > { %v416_v8 = vmul.f32 1.442695, %v415_v7 }
 0x18c   : > { %802 = vpow2.f32 %v416_v8 }
 0x196   : > { %v803_v9 = vpop.eup %802 }
 0x197   : > { %v418_v10 = vsel %vm335_vm1, %v803_v9, 0.0 }
 0x198   : > { %419 = vadd.xlane.f32.xlu0 %v418_v10 }
 0x225   : > { %v420_v12 = vpop.xlane.xlu0 %419 }
 0x226   : > { %804 = vrcp.f32 %v420_v12 }
 0x230   : > { %v805_v13 = vpop.eup %804 }
 0x231   : > { %v422_v14 = vmul.f32 %v805_v13, %v803_v9 }
 0x233   : > { %727 = vmatmul.mubr.msk.f32.vlgmr.msra.gmra.mrb[0].mxu1 %vm335_vm1, %v422_v14  ;;  %423 = vst.msk [vmem:[%s280_s11] sm:$0xff] %vm335_vm1, %v422_v14 }
 0x234   : > { %819 = shalt.err (!%p816_p7)
}
 0x235   : > { %s820_s18 = scalar_lea.hbm %s1031_s5, 128  ;;  %s824_s0 = scalar_lea.hbm %s1086_s3, 1024 }
 0x236   : > { %p821_p9 = scmp.ne.s32.totalorder %s1031_s5, %s820_s18  ;;  %p825_p12 = scmp.lt.u32.totalorder %s1031_s5, %s1086_s3 }
 0x237   : > { %p826_p13 = scmp.lt.u32.totalorder %s824_s0, %s820_s18  ;;  %p828_p1 = scmp.lt.u32.totalorder %s820_s18, %s1031_s5 }
 0x238   : > { %p822_p10 = pnand %p821_p9, %p981_p3 }
 0x239   : > { %p827_p0 = por %p826_p13, %p825_p12 }
 0x23a   : > { %p823_p11 = pneg %p822_p10 }
 0x23b   : > { %p829_p2 = por %p828_p1, %p827_p0 }
 0x23d   : > { %p830_p4 = pnand %p829_p2, %p823_p11 }
 0x23f   : > { %833 = shalt.err (!%p830_p4)
}
 0x240   : > { %729 = dma.vmem_to_hbm [thread:$0]  (%p981_p3), %s527_s24, 128, %s1031_s5, %s499_s6  }
 0x241   : > { %s331_s23 = scalar_lea.vmem %s1087_s4, %s1005_s12 }
 0x306   : > { %v493_v15 = vpop.f32.mrb[0].mxu1 }
 0x307   : > { %497 = vst.msk [vmem:[%s331_s23] sm:$0xff] %vm335_vm1, %v493_v15  ;;  %v728_v16 = vpop.f32.mrb[1].mxu1 }
 0x308 PF: > { %p735_p5 = scmp.ge.s32.totalorder %s900_s22, 2  ;;  %s541_s27 = sand.u32 1, %s872_s15  }
 0x309   : > { %s542_s28 = scalar_lea.sflag [#allocation3], %s541_s27 }
 0x30a   : > { %p732_p6 = pnand %p735_p5, %p990_p8 }
 0x30c   : > { %867 = dma.done.wait (!%p732_p6), %s542_s28, 128  }
 0x30d   : > { %869 = vsyncadd (!%p732_p6), %s542_s28, 4294967168  ;;  %s18_s22 = sadd.s32 1, %s900_s22   ;;  %s1094_s15 = smov %s876_s16 }
 0x30e   : > { %p15_p3 = scmp.ge.s32.totalorder %s18_s22, 10   ;;  %s1095_s16 = smov %s880_s17 }
 0x30f   : > { %s1096_s17 = smov %s999_s7  ;;  %s1097_s18 = smov %s892_s20 }
 0x310   : > { %s1098_s19 = smov %s896_s21  ;;  %s1099_s20 = smov %s1102_s25 }
 0x311   : > { %s1100_s21 = smov %s1106_s26  ;;  %17 = sbr.rel (!%p15_p3) target bundleno = 8 (0x8), region = 85 }
 0x318   :  { %561 = vsyncpa [#allocation3], 1 }
 0x319   :  { %563 = vsyncpa [#allocation3 + $0x1], 1 }

</bundles_post_ra>
